<compile_context>
chip_gen: v7x
topology: tpu7x:2x2x1
jax: 0.10.0
libtpu: 0.0.40
codegen_flags: <defaults>
</compile_context>

<pallas_src>
import jax
import jax.numpy as jnp
from jax.experimental import pallas as pl
from jax.experimental.pallas import tpu as pltpu


# ------------------------------------------------------------------ kernel ---
def _make_stam_kernel(nb, p):
    """nb = 4*B images total, p = patches per image (static)."""

    def stam_kernel(xp_ref, w0_ref, b0_ref, w1_ref, b1_ref,
                    w2_ref, b2_ref, wh_ref, bh_ref, out_ref):
        # xp_ref : [M, K] bf16   (M = 4*B*P, all 4 streams fused on rows)
        # w0/b0  : [K, E] bf16, [1, E] f32   patch embed
        # w1/b1  : [E, H] bf16, [1, H] f32   MLP up (GELU)
        # w2/b2  : [H, E] bf16, [1, E] f32   MLP down (residual)
        # wh/bh  : [E, D] bf16, [1, D] f32   feature head
        # out    : [4*B, D] f32  L2-normalized features
        xp = xp_ref[...]

        # patch embedding (bf16 operands, f32 accumulation on the MXU)
        z = jnp.dot(xp, w0_ref[...],
                    preferred_element_type=jnp.float32) + b0_ref[...]      # [M, E]

        # residual GELU MLP (stand-in transformer block)
        h = jax.nn.gelu(
            jnp.dot(z.astype(jnp.bfloat16), w1_ref[...],
                    preferred_element_type=jnp.float32) + b1_ref[...])     # [M, H]
        z = z + jnp.dot(h.astype(jnp.bfloat16), w2_ref[...],
                        preferred_element_type=jnp.float32) + b2_ref[...]  # [M, E]

        # per-image mean pool over the patch axis (rows of each image are
        # contiguous): [M, E] -> [4*B, P, E] -> mean over P  (XLU reduction)
        f = jnp.mean(z.reshape(nb, p, z.shape[-1]), axis=1)                # [4*B, E]

        # feature head
        y = jnp.dot(f.astype(jnp.bfloat16), wh_ref[...],
                    preferred_element_type=jnp.float32) + bh_ref[...]      # [4*B, D]

        # torch.div(y, torch.norm(y, 2, 1, True)) -> L2-normalize along dim 1
        inv = jax.lax.rsqrt(jnp.sum(y * y, axis=1, keepdims=True))         # [4*B, 1]
        out_ref[...] = y * inv

    return stam_kernel


# ----------------------------------------------------------------- wrapper ---
def extract_patches_stacked(x, ps):
    """[S, B, C, H, W] -> [S*B*P, C*ps*ps] non-overlapping patches (JAX glue)."""
    S, B, C, H, W = x.shape
    x = x.reshape(S, B, C, H // ps, ps, W // ps, ps)
    x = x.transpose(0, 1, 3, 5, 2, 4, 6)            # [S, B, Hp, Wp, C, ps, ps]
    return x.reshape(S * B * (H // ps) * (W // ps), C * ps * ps)


def init_params(key, K, E, H, D):
    ks = jax.random.split(key, 4)
    s = 0.05
    return dict(
        w0=(jax.random.normal(ks[0], (K, E), jnp.float32) * s).astype(jnp.bfloat16),
        b0=jnp.zeros((1, E), jnp.float32),
        w1=(jax.random.normal(ks[1], (E, H), jnp.float32) * s).astype(jnp.bfloat16),
        b1=jnp.zeros((1, H), jnp.float32),
        w2=(jax.random.normal(ks[2], (H, E), jnp.float32) * s).astype(jnp.bfloat16),
        b2=jnp.zeros((1, E), jnp.float32),
        wh=(jax.random.normal(ks[3], (E, D), jnp.float32) * s).astype(jnp.bfloat16),
        bh=jnp.zeros((1, D), jnp.float32),
    )


def stam_forward(input_day1, input_day2, input_night1, input_night2,
                 params, *, ps=4):
    """Shared (synthetic) backbone + L2-normalize over all 4 input streams."""
    inputs = jnp.stack(
        [input_day1, input_day2, input_night1, input_night2], axis=0)  # [4,B,C,H,W]
    S, B, C, Himg, Wimg = inputs.shape
    P = (Himg // ps) * (Wimg // ps)
    K = C * ps * ps
    M = S * B * P                 # fused row count for all streams
    NB = S * B                    # total images

    E = params["w0"].shape[1]
    H = params["w1"].shape[1]
    D = params["wh"].shape[1]

    # glue: patchify once on the stacked tensor, cast to bf16 for the MXU
    xp = extract_patches_stacked(inputs, ps).astype(jnp.bfloat16)      # [M, K]

    kernel = _make_stam_kernel(NB, P)
    zero2 = lambda i: (0, 0)

    flops = 2 * (M * K * E + M * E * H + M * H * E + NB * E * D)
    bytes_accessed = int(
        xp.size * 2
        + sum(int(v.size) * v.dtype.itemsize for v in params.values())
        + NB * D * 4)
    cost = pl.CostEstimate(flops=flops,
                           transcendentals=M * H + NB,
                           bytes_accessed=bytes_accessed)

    out = pl.pallas_call(
        kernel,
        out_shape=jax.ShapeDtypeStruct((NB, D), jnp.float32),
        grid=(1,),                                   # single fused invocation
        in_specs=[
            pl.BlockSpec((M, K), zero2),             # xp (4 streams fused on rows)
            pl.BlockSpec((K, E), zero2),             # w0
            pl.BlockSpec((1, E), zero2),             # b0
            pl.BlockSpec((E, H), zero2),             # w1
            pl.BlockSpec((1, H), zero2),             # b1
            pl.BlockSpec((H, E), zero2),             # w2
            pl.BlockSpec((1, E), zero2),             # b2
            pl.BlockSpec((E, D), zero2),             # wh
            pl.BlockSpec((1, D), zero2),             # bh
        ],
        out_specs=pl.BlockSpec((NB, D), zero2),      # lane-dense [4*B, D] slab
        compiler_params=pltpu.CompilerParams(
            dimension_semantics=("arbitrary",)),
        cost_estimate=cost,
    )(xp, params["w0"], params["b0"], params["w1"], params["b1"],
      params["w2"], params["b2"], params["wh"], params["bh"])

    out = out.reshape(S, B, D)
    return out[0], out[1], out[2], out[3]


# ------------------------------------------------------ pure-JAX reference ---
def stam_forward_ref(input_day1, input_day2, input_night1, input_night2,
                     params, *, ps=4):
    """Same math as the kernel, expressed in plain JAX (correctness oracle)."""
    inputs = jnp.stack(
        [input_day1, input_day2, input_night1, input_night2], axis=0)
    S, B, C, Himg, Wimg = inputs.shape
    P = (Himg // ps) * (Wimg // ps)
    NB = S * B

    xp = extract_patches_stacked(inputs, ps).astype(jnp.bfloat16)
    z = jnp.dot(xp, params["w0"],
                preferred_element_type=jnp.float32) + params["b0"]
    h = jax.nn.gelu(jnp.dot(z.astype(jnp.bfloat16), params["w1"],
                            preferred_element_type=jnp.float32) + params["b1"])
    z = z + jnp.dot(h.astype(jnp.bfloat16), params["w2"],
                    preferred_element_type=jnp.float32) + params["b2"]
    f = jnp.mean(z.reshape(NB, P, z.shape[-1]), axis=1)
    y = jnp.dot(f.astype(jnp.bfloat16), params["wh"],
                preferred_element_type=jnp.float32) + params["bh"]
    y = y / jnp.linalg.norm(y, axis=1, keepdims=True)
    y = y.reshape(S, B, -1)
    return y[0], y[1], y[2], y[3]


# -------------------------------------------------------------------- main ---
if __name__ == "__main__":
    # Small, deterministic example shapes consistent with the module.
    B, C, Himg, Wimg = 2, 4, 16, 16
    ps = 4
    E, H, D = 128, 128, 128       # lane-aligned synthetic backbone widths
    K = C * ps * ps               # 64

    key = jax.random.PRNGKey(0)
    k_in, k_par = jax.random.split(key)
    kd1, kd2, kn1, kn2 = jax.random.split(k_in, 4)

    input_day1 = jax.random.normal(kd1, (B, C, Himg, Wimg), jnp.float32)
    input_day2 = jax.random.normal(kd2, (B, C, Himg, Wimg), jnp.float32)
    input_night1 = jax.random.normal(kn1, (B, C, Himg, Wimg), jnp.float32)
    input_night2 = jax.random.normal(kn2, (B, C, Himg, Wimg), jnp.float32)

    params = init_params(k_par, K, E, H, D)

    outs = stam_forward(input_day1, input_day2, input_night1, input_night2,
                        params, ps=ps)
    outs = jax.block_until_ready(outs)

    # sanity 1: 4 outputs, each unit-norm along dim 1 (as in STAM.preprocessing)
    assert len(outs) == 4
    for o in outs:
        assert o.shape == (B, D)
        nrm = jnp.linalg.norm(o, axis=1)
        assert jnp.allclose(nrm, 1.0, atol=1e-4), nrm

    # sanity 2: kernel matches the pure-JAX reference of the same math
    refs = stam_forward_ref(input_day1, input_day2, input_night1, input_night2,
                            params, ps=ps)
    for o, r in zip(outs, refs):
        assert jnp.allclose(o, r, atol=2e-2, rtol=2e-2), (
            float(jnp.max(jnp.abs(o - r))))

    print("KERNEL_OK")
</pallas_src>

<mosaic_0001>
module attributes {stable_mosaic.version = 11 : i64} {
  func.func @stam_kernel(%arg0: i32, %arg1: memref<128x64xbf16, #tpu.memory_space<vmem>>, %arg2: memref<64x128xbf16, #tpu.memory_space<vmem>>, %arg3: memref<1x128xf32, #tpu.memory_space<vmem>>, %arg4: memref<128x128xbf16, #tpu.memory_space<vmem>>, %arg5: memref<1x128xf32, #tpu.memory_space<vmem>>, %arg6: memref<128x128xbf16, #tpu.memory_space<vmem>>, %arg7: memref<1x128xf32, #tpu.memory_space<vmem>>, %arg8: memref<128x128xbf16, #tpu.memory_space<vmem>>, %arg9: memref<1x128xf32, #tpu.memory_space<vmem>>, %arg10: memref<8x128xf32, #tpu.memory_space<vmem>>) attributes {dimension_semantics = [#tpu.dimension_semantics<arbitrary>], iteration_bounds = array<i64: 1>, scalar_prefetch = 0 : i64, scratch_operands = 0 : i64, tpu.core_type = #tpu.core_type<tc>, window_params = [{pipeline_mode = #tpu.pipeline_mode<synchronous>, transform_indices = @transform_0, window_bounds = array<i64: 128, 64>}, {pipeline_mode = #tpu.pipeline_mode<synchronous>, transform_indices = @transform_1, window_bounds = array<i64: 64, 128>}, {pipeline_mode = #tpu.pipeline_mode<synchronous>, transform_indices = @transform_2, window_bounds = array<i64: 1, 128>}, {pipeline_mode = #tpu.pipeline_mode<synchronous>, transform_indices = @transform_3, window_bounds = array<i64: 128, 128>}, {pipeline_mode = #tpu.pipeline_mode<synchronous>, transform_indices = @transform_4, window_bounds = array<i64: 1, 128>}, {pipeline_mode = #tpu.pipeline_mode<synchronous>, transform_indices = @transform_5, window_bounds = array<i64: 128, 128>}, {pipeline_mode = #tpu.pipeline_mode<synchronous>, transform_indices = @transform_6, window_bounds = array<i64: 1, 128>}, {pipeline_mode = #tpu.pipeline_mode<synchronous>, transform_indices = @transform_7, window_bounds = array<i64: 128, 128>}, {pipeline_mode = #tpu.pipeline_mode<synchronous>, transform_indices = @transform_8, window_bounds = array<i64: 1, 128>}, {pipeline_mode = #tpu.pipeline_mode<synchronous>, transform_indices = @transform_9, window_bounds = array<i64: 8, 128>}]} {
    %c0 = arith.constant 0 : index
    %c0_0 = arith.constant 0 : index
    %0 = vector.load %arg1[%c0, %c0_0] : memref<128x64xbf16, #tpu.memory_space<vmem>>, vector<128x64xbf16>
    %c0_1 = arith.constant 0 : index
    %c0_2 = arith.constant 0 : index
    %1 = vector.load %arg2[%c0_1, %c0_2] : memref<64x128xbf16, #tpu.memory_space<vmem>>, vector<64x128xbf16>
    %cst = arith.constant dense<0.000000e+00> : vector<128x128xf32>
    %2 = tpu.matmul %0, %1, %cst {dimension_numbers = #tpu.dot_dimension_numbers<[1], [0], [0], [1], [0, 0, 1, 1], [], []>} : vector<128x64xbf16>, vector<64x128xbf16>, vector<128x128xf32> -> vector<128x128xf32>
    %c0_3 = arith.constant 0 : index
    %c0_4 = arith.constant 0 : index
    %3 = vector.load %arg3[%c0_3, %c0_4] : memref<1x128xf32, #tpu.memory_space<vmem>>, vector<1x128xf32>
    %4 = vector.broadcast %3 : vector<1x128xf32> to vector<128x128xf32>
    %5 = arith.addf %2, %4 : vector<128x128xf32>
    %6 = arith.truncf %5 : vector<128x128xf32> to vector<128x128xbf16>
    %c0_5 = arith.constant 0 : index
    %c0_6 = arith.constant 0 : index
    %7 = vector.load %arg4[%c0_5, %c0_6] : memref<128x128xbf16, #tpu.memory_space<vmem>>, vector<128x128xbf16>
    %cst_7 = arith.constant dense<0.000000e+00> : vector<128x128xf32>
    %8 = tpu.matmul %6, %7, %cst_7 {dimension_numbers = #tpu.dot_dimension_numbers<[1], [0], [0], [1], [0, 0, 1, 1], [], []>} : vector<128x128xbf16>, vector<128x128xbf16>, vector<128x128xf32> -> vector<128x128xf32>
    %c0_8 = arith.constant 0 : index
    %c0_9 = arith.constant 0 : index
    %9 = vector.load %arg5[%c0_8, %c0_9] : memref<1x128xf32, #tpu.memory_space<vmem>>, vector<1x128xf32>
    %10 = vector.broadcast %9 : vector<1x128xf32> to vector<128x128xf32>
    %11 = arith.addf %8, %10 : vector<128x128xf32>
    %12 = arith.mulf %11, %11 : vector<128x128xf32>
    %13 = arith.mulf %11, %12 : vector<128x128xf32>
    %cst_10 = arith.constant 4.471500e-02 : f32
    %14 = vector.broadcast %cst_10 : f32 to vector<128x128xf32>
    %15 = arith.mulf %14, %13 : vector<128x128xf32>
    %16 = arith.addf %11, %15 : vector<128x128xf32>
    %cst_11 = arith.constant 0.797884583 : f32
    %17 = vector.broadcast %cst_11 : f32 to vector<128x128xf32>
    %18 = arith.mulf %17, %16 : vector<128x128xf32>
    %19 = math.tanh %18 : vector<128x128xf32>
    %cst_12 = arith.constant 1.000000e+00 : f32
    %20 = vector.broadcast %cst_12 : f32 to vector<128x128xf32>
    %21 = arith.addf %20, %19 : vector<128x128xf32>
    %cst_13 = arith.constant 5.000000e-01 : f32
    %22 = vector.broadcast %cst_13 : f32 to vector<128x128xf32>
    %23 = arith.mulf %22, %21 : vector<128x128xf32>
    %24 = arith.mulf %11, %23 : vector<128x128xf32>
    %25 = arith.truncf %24 : vector<128x128xf32> to vector<128x128xbf16>
    %c0_14 = arith.constant 0 : index
    %c0_15 = arith.constant 0 : index
    %26 = vector.load %arg6[%c0_14, %c0_15] : memref<128x128xbf16, #tpu.memory_space<vmem>>, vector<128x128xbf16>
    %cst_16 = arith.constant dense<0.000000e+00> : vector<128x128xf32>
    %27 = tpu.matmul %25, %26, %cst_16 {dimension_numbers = #tpu.dot_dimension_numbers<[1], [0], [0], [1], [0, 0, 1, 1], [], []>} : vector<128x128xbf16>, vector<128x128xbf16>, vector<128x128xf32> -> vector<128x128xf32>
    %28 = arith.addf %5, %27 : vector<128x128xf32>
    %c0_17 = arith.constant 0 : index
    %c0_18 = arith.constant 0 : index
    %29 = vector.load %arg7[%c0_17, %c0_18] : memref<1x128xf32, #tpu.memory_space<vmem>>, vector<1x128xf32>
    %30 = vector.broadcast %29 : vector<1x128xf32> to vector<128x128xf32>
    %31 = arith.addf %28, %30 : vector<128x128xf32>
    %32 = vector.shape_cast %31 : vector<128x128xf32> to vector<8x16x128xf32>
    %cst_19 = arith.constant dense<0.000000e+00> : vector<8x128xf32>
    %33 = vector.multi_reduction <add>, %32, %cst_19 [1] : vector<8x16x128xf32> to vector<8x128xf32>
    %cst_20 = arith.constant 1.600000e+01 : f32
    %34 = vector.broadcast %cst_20 : f32 to vector<8x128xf32>
    %35 = arith.divf %33, %34 : vector<8x128xf32>
    %36 = arith.truncf %35 : vector<8x128xf32> to vector<8x128xbf16>
    %c0_21 = arith.constant 0 : index
    %c0_22 = arith.constant 0 : index
    %37 = vector.load %arg8[%c0_21, %c0_22] : memref<128x128xbf16, #tpu.memory_space<vmem>>, vector<128x128xbf16>
    %cst_23 = arith.constant dense<0.000000e+00> : vector<8x128xf32>
    %38 = tpu.matmul %36, %37, %cst_23 {dimension_numbers = #tpu.dot_dimension_numbers<[1], [0], [0], [1], [0, 0, 1, 1], [], []>} : vector<8x128xbf16>, vector<128x128xbf16>, vector<8x128xf32> -> vector<8x128xf32>
    %c0_24 = arith.constant 0 : index
    %c0_25 = arith.constant 0 : index
    %39 = vector.load %arg9[%c0_24, %c0_25] : memref<1x128xf32, #tpu.memory_space<vmem>>, vector<1x128xf32>
    %40 = vector.broadcast %39 : vector<1x128xf32> to vector<8x128xf32>
    %41 = arith.addf %38, %40 : vector<8x128xf32>
    %42 = arith.mulf %41, %41 : vector<8x128xf32>
    %cst_26 = arith.constant dense<0.000000e+00> : vector<8xf32>
    %43 = vector.multi_reduction <add>, %42, %cst_26 [1] : vector<8x128xf32> to vector<8xf32>
    %44 = vector.shape_cast %43 : vector<8xf32> to vector<8x1xf32>
    %45 = math.rsqrt %44 : vector<8x1xf32>
    %46 = vector.broadcast %45 : vector<8x1xf32> to vector<8x128xf32>
    %47 = arith.mulf %41, %46 : vector<8x128xf32>
    %c0_27 = arith.constant 0 : index
    %c0_28 = arith.constant 0 : index
    %48 = vector.load %arg10[%c0_27, %c0_28] : memref<8x128xf32, #tpu.memory_space<vmem>>, vector<8x128xf32>
    tpu.vector_store %arg10[%c0_27, %c0_28], %47 {strides = array<i32>} : memref<8x128xf32, #tpu.memory_space<vmem>>, vector<8x128xf32>,
    return
  }
  func.func @transform_0(%arg0: i32) -> (i32, i32) {
    %c0_i32 = arith.constant 0 : i32
    %c0_i32_0 = arith.constant 0 : i32
    %c0_i32_1 = arith.constant 0 : i32
    return %c0_i32, %c0_i32_0 : i32, i32
  }
  func.func @transform_1(%arg0: i32) -> (i32, i32) {
    %c0_i32 = arith.constant 0 : i32
    %c0_i32_0 = arith.constant 0 : i32
    %c0_i32_1 = arith.constant 0 : i32
    return %c0_i32, %c0_i32_0 : i32, i32
  }
  func.func @transform_2(%arg0: i32) -> (i32, i32) {
    %c0_i32 = arith.constant 0 : i32
    %c0_i32_0 = arith.constant 0 : i32
    %c0_i32_1 = arith.constant 0 : i32
    return %c0_i32, %c0_i32_0 : i32, i32
  }
  func.func @transform_3(%arg0: i32) -> (i32, i32) {
    %c0_i32 = arith.constant 0 : i32
    %c0_i32_0 = arith.constant 0 : i32
    %c0_i32_1 = arith.constant 0 : i32
    return %c0_i32, %c0_i32_0 : i32, i32
  }
  func.func @transform_4(%arg0: i32) -> (i32, i32) {
    %c0_i32 = arith.constant 0 : i32
    %c0_i32_0 = arith.constant 0 : i32
    %c0_i32_1 = arith.constant 0 : i32
    return %c0_i32, %c0_i32_0 : i32, i32
  }
  func.func @transform_5(%arg0: i32) -> (i32, i32) {
    %c0_i32 = arith.constant 0 : i32
    %c0_i32_0 = arith.constant 0 : i32
    %c0_i32_1 = arith.constant 0 : i32
    return %c0_i32, %c0_i32_0 : i32, i32
  }
  func.func @transform_6(%arg0: i32) -> (i32, i32) {
    %c0_i32 = arith.constant 0 : i32
    %c0_i32_0 = arith.constant 0 : i32
    %c0_i32_1 = arith.constant 0 : i32
    return %c0_i32, %c0_i32_0 : i32, i32
  }
  func.func @transform_7(%arg0: i32) -> (i32, i32) {
    %c0_i32 = arith.constant 0 : i32
    %c0_i32_0 = arith.constant 0 : i32
    %c0_i32_1 = arith.constant 0 : i32
    return %c0_i32, %c0_i32_0 : i32, i32
  }
  func.func @transform_8(%arg0: i32) -> (i32, i32) {
    %c0_i32 = arith.constant 0 : i32
    %c0_i32_0 = arith.constant 0 : i32
    %c0_i32_1 = arith.constant 0 : i32
    return %c0_i32, %c0_i32_0 : i32, i32
  }
  func.func @transform_9(%arg0: i32) -> (i32, i32) {
    %c0_i32 = arith.constant 0 : i32
    %c0_i32_0 = arith.constant 0 : i32
    %c0_i32_1 = arith.constant 0 : i32
    return %c0_i32, %c0_i32_0 : i32, i32
  }
}

</mosaic_0001>

<bundles_post_ra>
// kernel: tpu_custom_call.1
= control target key start
LH: loop header
LB: loop body
LE: loop exit
PB: predicated region body
PF: predicated region fallthrough
CT: control target
= control target key end

     0   :  { %14 = vsyncpa [#allocation3], 0  ;;  %s1789_s0 = inlined_call_operand.vmem [shape: bf16[128,64], index: 0, kind: input, shape index: {}]   ;;  %s1790_s1 = inlined_call_operand.vmem [shape: bf16[64,128], index: 1, kind: input, shape index: {}]   ;;  %s1791_s2 = inlined_call_operand.vmem [shape: f32[1,128], index: 2, kind: input, shape index: {}]   ;;  %s1792_s3 = inlined_call_operand.vmem [shape: bf16[128,128], index: 3, kind: input, shape index: {}]   ;;  %s1793_s4 = inlined_call_operand.vmem [shape: f32[1,128], index: 4, kind: input, shape index: {}]   ;;  %s1794_s5 = inlined_call_operand.hbm [shape: bf16[128,128], index: 5, kind: input, shape index: {}]   ;;  %s1795_s6 = inlined_call_operand.vmem [shape: f32[1,128], index: 6, kind: input, shape index: {}]   ;;  %s1796_s7 = inlined_call_operand.hbm [shape: bf16[128,128], index: 7, kind: input, shape index: {}]   ;;  %s1797_s8 = inlined_call_operand.vmem [shape: f32[1,128], index: 8, kind: input, shape index: {}]   ;;  %s1798_s9 = inlined_call_operand.hbm [shape: f32[8,128], index: 9, kind: output, shape index: {}]  }
   0x1   :  { %15 = vsyncpa [#allocation6], 0 }
   0x2   :  { %16 = vsyncpa [#allocation4], 0  ;;  %s1403_s30 = smov [#allocation2]   ;;  %s1331_s13 = scalar_lea.hbm %s1794_s5, 1024 }
   0x3   :  { %s32_s10 = sshll.u32 %s1403_s30, 4  ;;  %p1332_p0 = scmp.ne.s32.totalorder %s1794_s5, %s1331_s13  ;;  %s33_s10 = int_to_ptr.vmem [resolvable:$true] %s32_s10 }
   0x4   :  { %p1335_p1 = scmp.lt.u32.totalorder %s1331_s13, %s1794_s5 }
   0x6   :  { %p1337_p2 = pnand %p1335_p1, %p1332_p0 }
   0x8   :  { %1340 = shalt.err (!%p1337_p2)
}
   0x9   :  { %s1341_s18 = scalar_lea.vmem %s33_s10, 1024  ;;  %p1346_p4 = scmp.lt.s32.totalorder %s33_s10, %s33_s10 }
   0xa   :  { %p1342_p3 = scmp.ne.s32.totalorder %s33_s10, %s1341_s18  ;;  %p1347_p5 = scmp.lt.s32.totalorder %s1341_s18, %s1341_s18 }
   0xc   :  { %p1348_p6 = por %p1347_p5, %p1346_p4 }
   0xe   :  { %p1349_p7 = pnand %p1348_p6, %p1342_p3 }
  0x10   :  { %1352 = shalt.err (!%p1349_p7)
}
  0x11   :  { %s1404_s19 = smov 64   ;;  %s1405_s20 = smov 4  }
  0x12   :  { %38 = dma.hbm_to_vmem [thread:$0]  %s1794_s5, 1024, %s33_s10, [#allocation3], %s1404_s19, %s1404_s19, %s1405_s20  }
  0x13   :  { %s1406_s23 = smov [#allocation5]   ;;  %s1353_s27 = scalar_lea.hbm %s1796_s7, 1024 }
  0x14   :  { %s46_s24 = sshll.u32 %s1406_s23, 4  ;;  %p1354_p8 = scmp.ne.s32.totalorder %s1796_s7, %s1353_s27  ;;  %s47_s24 = int_to_ptr.vmem [resolvable:$true] %s46_s24 }
  0x15   :  { %p1357_p9 = scmp.lt.u32.totalorder %s1353_s27, %s1796_s7 }
  0x17   :  { %p1359_p10 = pnand %p1357_p9, %p1354_p8 }
  0x19   :  { %1362 = shalt.err (!%p1359_p10)
}
  0x1a   :  { %s1363_s12 = scalar_lea.vmem %s47_s24, 1024  ;;  %p1368_p12 = scmp.lt.s32.totalorder %s47_s24, %s47_s24 }
  0x1b   :  { %p1364_p11 = scmp.ne.s32.totalorder %s47_s24, %s1363_s12  ;;  %p1369_p13 = scmp.lt.s32.totalorder %s1363_s12, %s1363_s12 }
  0x1d   :  { %p1370_p0 = por %p1369_p13, %p1368_p12 }
  0x1f   :  { %p1371_p1 = pnand %p1370_p0, %p1364_p11 }
  0x21   :  { %1374 = shalt.err (!%p1371_p1)
}
  0x22   :  { %52 = dma.hbm_to_vmem [thread:$0]  %s1796_s7, 1024, %s47_s24, [#allocation6], %s1404_s19, %s1404_s19, %s1405_s20  }
  0x23   :  { %1397 = dma.done.wait [#allocation3], 1024  }
  0x24   :  { %1398 = vsyncadd [#allocation3], 4294966272 }
  0x25   :  { %1399 = dma.done.wait [#allocation6], 1024  }
  0x26   :  { %1400 = vsyncadd [#allocation6], 4294966272  ;;  %v1261_v0 = vld [vmem:[%s1790_s1] sm:$0xff]   ;;  %v1262_v1 = vld [vmem:[%s1790_s1 + $0x8] sm:$0xff]   ;;  %vm157_vm0 = vcmask 523264   ;;  %vm1408_vm1 = vmmov 0  }
  0x27   :  { %1146 = vmatprep.subr.bf16.mxu0 %v1261_v0  ;;  %v1263_v2 = vld [vmem:[%s1790_s1 + $0x10] sm:$0xff]   ;;  %v1265_v3 = vld [vmem:[%s1789_s0] sm:$0xff]   ;;  %v1264_v4 = vld [vmem:[%s1790_s1 + $0x18] sm:$0xff]   ;;  %vm919_vm2 = vcmask 1041409   ;;  %vm921_vm3 = vcmask 1042434   ;;  %vm923_vm4 = vcmask 1043459  }
  0x28   :  { %1147 = vmatpush3.bf16.msra.mxu0 %v1261_v0  ;;  %1154 = vmatprep.mubr.msk.bf16.mxu0 %vm157_vm0, %v1265_v3  ;;  %v1273_v5 = vld [vmem:[%s1792_s3] sm:$0xff]   ;;  %v1274_v6 = vld [vmem:[%s1792_s3 + $0x8] sm:$0xff]   ;;  %v1267_v8 = vld [vmem:[%s1789_s0 + $0x10] sm:$0xff]   ;;  %vm925_vm5 = vcmask 1044484   ;;  %vm927_vm6 = vcmask 1045509   ;;  %vm929_vm7 = vcmask 1046534  }
  0x29   :  { %1148 = vmatprep.subr.bf16.mxu0 %v1262_v1  ;;  %v1266_v7 = vld [vmem:[%s1789_s0 + $0x8] sm:$0xff]   ;;  %1170 = vmatprep.subr.bf16.mxu1 %v1273_v5  ;;  %v1275_v9 = vld [vmem:[%s1792_s3 + $0x10] sm:$0xff]   ;;  %v1276_v10 = vld [vmem:[%s1792_s3 + $0x18] sm:$0xff]   ;;  %vm931_vm8 = vcmask 1047559   ;;  %s1409_s30 = smov [#allocation7]  }
  0x2a   :  { %1171 = vmatpush3.bf16.msra.mxu1 %v1273_v5  ;;  %v1268_v11 = vld [vmem:[%s1789_s0 + $0x18] sm:$0xff]   ;;  %v1269_v12 = vld [vmem:[%s1789_s0 + $0x20] sm:$0xff]   ;;  %v1278_v14 = vld [vmem:[%s1792_s3 + $0x28] sm:$0xff]   ;;  %s1035_s11 = sshll.u32 %s1409_s30, 4  ;;  %s1036_s11 = int_to_ptr.vmem [resolvable:$true] %s1035_s11 }
  0x2b   :  { %1172 = vmatprep.subr.bf16.mxu1 %v1274_v6  ;;  %v1277_v13 = vld [vmem:[%s1792_s3 + $0x20] sm:$0xff]   ;;  %v1270_v15 = vld [vmem:[%s1789_s0 + $0x28] sm:$0xff]   ;;  %v1271_v16 = vld [vmem:[%s1789_s0 + $0x30] sm:$0xff]   ;;  %s1375_s12 = scalar_lea.vmem %s1036_s11, 128  ;;  %p1380_p3 = scmp.lt.s32.totalorder %s1036_s11, %s1036_s11 }
  0x2c   :  { %1149 = vmatpush3.bf16.msra.mxu0 %v1262_v1  ;;  %v1272_v17 = vld [vmem:[%s1789_s0 + $0x38] sm:$0xff]   ;;  %v1279_v18 = vld [vmem:[%s1792_s3 + $0x30] sm:$0xff]   ;;  %v1045_v21 = vld [vmem:[%s1791_s2] ss:$0 sm:$0xff]  ;;  %p1376_p2 = scmp.ne.s32.totalorder %s1036_s11, %s1375_s12  ;;  %p1381_p4 = scmp.lt.s32.totalorder %s1375_s12, %s1375_s12 }
  0x2d   :  { %1150 = vmatprep.subr.bf16.mxu0 %v1263_v2  ;;  %v1280_v19 = vld [vmem:[%s1792_s3 + $0x38] sm:$0xff]   ;;  %v1281_v61 = vld [vmem:[#allocation2] sm:$0xff]   ;;  %v1282_v62 = vld [vmem:[#allocation2 + $0x8] sm:$0xff]  }
  0x2e   :  { %1173 = vmatpush3.bf16.msra.mxu1 %v1274_v6  ;;  %v1283_v63 = vld [vmem:[#allocation2 + $0x10] sm:$0xff]   ;;  %v1284_v0 = vld [vmem:[#allocation2 + $0x18] sm:$0xff]   ;;  %v1285_v1 = vld [vmem:[#allocation2 + $0x20] sm:$0xff]   ;;  %p1382_p5 = por %p1381_p4, %p1380_p3 }
  0x2f   :  { %1174 = vmatprep.subr.bf16.mxu1 %v1275_v9  ;;  %v1287_v3 = vld [vmem:[#allocation2 + $0x30] sm:$0xff]   ;;  %v1606_v5 = vld [vmem:[%s1793_s4] ss:$0 sm:$0xff] }
  0x30   :  { %1151 = vmatpush3.bf16.msra.mxu0 %v1263_v2  ;;  %v1286_v2 = vld [vmem:[#allocation2 + $0x28] sm:$0xff]   ;;  %p1383_p6 = pnand %p1382_p5, %p1376_p2 }
  0x31   :  { %1152 = vmatprep.subr.bf16.mxu0 %v1264_v4 }
  0x32   :  { %1175 = vmatpush3.bf16.msra.mxu1 %v1275_v9 }
  0x33   :  { %1176 = vmatprep.subr.bf16.mxu1 %v1276_v10 }
  0x34   :  { %1153 = vmatpush3.bf16.msra.mxu0 %v1264_v4  ;;  %v1288_v4 = vld [vmem:[#allocation2 + $0x38] sm:$0xff]  }
  0x35   :  { %1202 = vmatprep.subr.bf16.mxu0 %v1281_v61 }
  0x36   :  { %1177 = vmatpush3.bf16.msra.mxu1 %v1276_v10 }
  0x37   :  { %1155 = vmatmul.mubr.msk.bf16.vlgmr.msra.gmra.mrb[0].mxu0 %vm157_vm0, %v1266_v7  ;;  %1178 = vmatprep.subr.bf16.mxu1 %v1277_v13 }
  0x38   :  { %1158 = vmatprep.mubr.msk.bf16.mxu0 %vm157_vm0, %v1267_v8  ;;  %1203 = vmatpush3.bf16.msra.mxu0 %v1281_v61 }
  0x39   :  { %1204 = vmatprep.subr.bf16.mxu0 %v1282_v62 }
  0x3a   :  { %1179 = vmatpush3.bf16.msra.mxu1 %v1277_v13 }
  0x3b   :  { %1180 = vmatprep.subr.bf16.mxu1 %v1278_v14 }
  0x3c   :  { %1205 = vmatpush3.bf16.msra.mxu0 %v1282_v62 }
  0x3d   :  { %1206 = vmatprep.subr.bf16.mxu0 %v1283_v63 }
  0x3e   :  { %1181 = vmatpush3.bf16.msra.mxu1 %v1278_v14 }
  0x3f   :  { %1159 = vmatmul.mubr.msk.bf16.gmra.mrb[4].mxu0 %vm157_vm0, %v1268_v11  ;;  %1182 = vmatprep.subr.bf16.mxu1 %v1279_v18 }
  0x40   :  { %1162 = vmatprep.mubr.msk.bf16.mxu0 %vm157_vm0, %v1269_v12  ;;  %1207 = vmatpush3.bf16.msra.mxu0 %v1283_v63 }
  0x41   :  { %1208 = vmatprep.subr.bf16.mxu0 %v1284_v0 }
  0x42   :  { %1183 = vmatpush3.bf16.msra.mxu1 %v1279_v18 }
  0x43   :  { %1184 = vmatprep.subr.bf16.mxu1 %v1280_v19 }
  0x44   :  { %1209 = vmatpush3.bf16.msra.mxu0 %v1284_v0 }
  0x45   :  { %1210 = vmatprep.subr.bf16.mxu0 %v1285_v1 }
  0x46   :  { %1185 = vmatpush3.bf16.msra.mxu1 %v1280_v19 }
  0x47   :  { %1163 = vmatmul.mubr.msk.bf16.gmra.mrb[8].mxu0 %vm157_vm0, %v1270_v15 }
  0x48   :  { %1166 = vmatprep.mubr.msk.bf16.mxu0 %vm157_vm0, %v1271_v16  ;;  %1211 = vmatpush3.bf16.msra.mxu0 %v1285_v1 }
  0x49   :  { %1212 = vmatprep.subr.bf16.mxu0 %v1286_v2 }
  0x4c   :  { %1213 = vmatpush3.bf16.msra.mxu0 %v1286_v2 }
  0x4d   :  { %1214 = vmatprep.subr.bf16.mxu0 %v1287_v3 }
  0x4f   :  { %1167 = vmatmul.mubr.msk.bf16.gmra.mrb[12].mxu0 %vm157_vm0, %v1272_v17 }
  0x50   :  { %1215 = vmatpush3.bf16.msra.mxu0 %v1287_v3 }
  0x51   :  { %1216 = vmatprep.subr.bf16.mxu0 %v1288_v4 }
  0x54   :  { %1217 = vmatpush3.bf16.msra.mxu0 %v1288_v4 }
 0x10a   :  { %v1156_v20 = vpop.f32.mrb[0].mxu0 }
 0x10b   :  { %v216_v22 = vpop.f32.mrb[1].mxu0  ;;  %v1561_v28 = vadd.f32 %v1156_v20, %v1045_v21 }
 0x10c   :  { %v1157_v23 = vpop.f32.mrb[2].mxu0  ;;  %v1557_v26 = vadd.f32 %v1045_v21, %v216_v22 }
 0x10d   :  { %v1555_v24 = vadd.f32 %v1157_v23, %v1045_v21  ;;  %v219_v25 = vpop.f32.mrb[3].mxu0 }
 0x10e   :  { %v1559_v27 = vadd.f32 %v1045_v21, %v219_v25 }
 0x10f   :  { %v280_v30 = vpack.c.bf16 %v1555_v24, %v1561_v28 }
 0x110   :  { %v279_v29 = vpack.c.bf16 %v1559_v27, %v1557_v26 }
 0x112   :  { %v1160_v31 = vpop.f32.mrb[4].mxu0  ;;  %1186 = vmatprep.mubr.bf16.mxu1 %v279_v29 }
 0x113   :  { %v232_v32 = vpop.f32.mrb[5].mxu0  ;;  %1187 = vmatmul.mubr.bf16.vlgmr.msra.gmra.mrb[0].mxu1 %v280_v30  ;;  %v1573_v38 = vadd.f32 %v1160_v31, %v1045_v21 }
 0x114   :  { %v1161_v33 = vpop.f32.mrb[6].mxu0  ;;  %v1569_v36 = vadd.f32 %v1045_v21, %v232_v32 }
 0x115   :  { %v1567_v34 = vadd.f32 %v1161_v33, %v1045_v21  ;;  %v235_v35 = vpop.f32.mrb[7].mxu0 }
 0x116   :  { %v1571_v37 = vadd.f32 %v1045_v21, %v235_v35 }
 0x117   :  { %v282_v40 = vpack.c.bf16 %v1567_v34, %v1573_v38 }
 0x118   :  { %v281_v39 = vpack.c.bf16 %v1571_v37, %v1569_v36 }
 0x11a   :  { %v1164_v41 = vpop.f32.mrb[8].mxu0  ;;  %1190 = vmatprep.mubr.bf16.mxu1 %v281_v39 }
 0x11b   :  { %v248_v42 = vpop.f32.mrb[9].mxu0  ;;  %1191 = vmatmul.mubr.bf16.gmra.mrb[4].mxu1 %v282_v40  ;;  %v1585_v48 = vadd.f32 %v1164_v41, %v1045_v21 }
 0x11c   :  { %v1165_v43 = vpop.f32.mrb[10].mxu0  ;;  %v1581_v46 = vadd.f32 %v1045_v21, %v248_v42 }
 0x11d   :  { %v1579_v44 = vadd.f32 %v1165_v43, %v1045_v21  ;;  %v251_v45 = vpop.f32.mrb[11].mxu0 }
 0x11e   :  { %v1583_v47 = vadd.f32 %v1045_v21, %v251_v45 }
 0x11f   :  { %v284_v50 = vpack.c.bf16 %v1579_v44, %v1585_v48 }
 0x120   :  { %v283_v49 = vpack.c.bf16 %v1583_v47, %v1581_v46 }
 0x122   :  { %v1168_v51 = vpop.f32.mrb[12].mxu0  ;;  %1194 = vmatprep.mubr.bf16.mxu1 %v283_v49 }
 0x123   :  { %v264_v52 = vpop.f32.mrb[13].mxu0  ;;  %1195 = vmatmul.mubr.bf16.gmra.mrb[8].mxu1 %v284_v50  ;;  %v1597_v58 = vadd.f32 %v1168_v51, %v1045_v21 }
 0x124   :  { %v1169_v53 = vpop.f32.mrb[14].mxu0  ;;  %v1593_v56 = vadd.f32 %v1045_v21, %v264_v52 }
 0x125   :  { %v1591_v54 = vadd.f32 %v1169_v53, %v1045_v21  ;;  %v267_v55 = vpop.f32.mrb[15].mxu0 }
 0x126   :  { %v1595_v57 = vadd.f32 %v1045_v21, %v267_v55 }
 0x127   :  { %v286_v60 = vpack.c.bf16 %v1591_v54, %v1597_v58 }
 0x128   :  { %v285_v59 = vpack.c.bf16 %v1595_v57, %v1593_v56 }
 0x12a   :  { %1198 = vmatprep.mubr.bf16.mxu1 %v285_v59 }
 0x12b   :  { %1199 = vmatmul.mubr.bf16.gmra.mrb[12].mxu1 %v286_v60 }
 0x1e6   :  { %v1188_v6 = vpop.f32.mrb[0].mxu1 }
 0x1e7   :  { %v1609_v7 = vadd.f32 %v1188_v6, %v1606_v5  ;;  %v392_v8 = vpop.f32.mrb[1].mxu1 }
 0x1e8   :  { %v1612_v9 = vadd.f32 %v1606_v5, %v392_v8  ;;  %v1189_v10 = vpop.f32.mrb[2].mxu1 }
 0x1e9   :  { %v457_v11 = vmul.f32 %v1609_v7, %v1609_v7  ;;  %v1617_v12 = vadd.f32 %v1189_v10, %v1606_v5  ;;  %v395_v13 = vpop.f32.mrb[3].mxu1 }
 0x1ea   :  { %v455_v14 = vmul.f32 %v1612_v9, %v1612_v9  ;;  %v1622_v15 = vadd.f32 %v1606_v5, %v395_v13 }
 0x1eb   :  { %v473_v16 = vmul.f32 %v457_v11, %v1609_v7  ;;  %v458_v17 = vmul.f32 %v1617_v12, %v1617_v12 }
 0x1ec   :  { %v471_v18 = vmul.f32 %v455_v14, %v1612_v9  ;;  %v456_v19 = vmul.f32 %v1622_v15, %v1622_v15 }
 0x1ed   :  { %v489_v20 = vmul.f32 0.044715, %v473_v16  ;;  %v474_v21 = vmul.f32 %v458_v17, %v1617_v12 }
 0x1ee   :  { %v487_v22 = vmul.f32 0.044715, %v471_v18  ;;  %v472_v23 = vmul.f32 %v456_v19, %v1622_v15  ;;  %v1192_v25 = vpop.f32.mrb[4].mxu1 }
 0x1ef   :  { %v505_v29 = vadd.f32 %v489_v20, %v1609_v7  ;;  %v490_v30 = vmul.f32 0.044715, %v474_v21  ;;  %v1634_v31 = vadd.f32 %v1192_v25, %v1606_v5  ;;  %v408_v32 = vpop.f32.mrb[5].mxu1 }
 0x1f0   :  { %v503_v33 = vadd.f32 %v487_v22, %v1612_v9  ;;  %v488_v35 = vmul.f32 0.044715, %v472_v23  ;;  %v1638_v39 = vadd.f32 %v1606_v5, %v408_v32  ;;  %v1193_v40 = vpop.f32.mrb[6].mxu1 }
 0x1f1   :  { %v521_v41 = vmul.f32 0.7978846, %v505_v29  ;;  %v506_v42 = vadd.f32 %v490_v30, %v1617_v12  ;;  %v461_v43 = vmul.f32 %v1634_v31, %v1634_v31  ;;  %v1644_v45 = vadd.f32 %v1193_v40, %v1606_v5  ;;  %v411_v49 = vpop.f32.mrb[7].mxu1 }
 0x1f2   :  { %v519_v50 = vmul.f32 0.7978846, %v503_v33  ;;  %v504_v51 = vadd.f32 %v488_v35, %v1622_v15  ;;  %v459_v52 = vmul.f32 %v1638_v39, %v1638_v39  ;;  %v1650_v53 = vadd.f32 %v1606_v5, %v411_v49 }
 0x1f3   :  { %1297 = vtanh.f32 %v521_v41  ;;  %v522_v55 = vmul.f32 0.7978846, %v506_v42  ;;  %v477_v59 = vmul.f32 %v461_v43, %v1634_v31  ;;  %v462_v60 = vmul.f32 %v1644_v45, %v1644_v45 }
 0x1f4   :  { %1299 = vtanh.f32 %v519_v50  ;;  %v520_v61 = vmul.f32 0.7978846, %v504_v51  ;;  %v475_v62 = vmul.f32 %v459_v52, %v1638_v39  ;;  %v460_v63 = vmul.f32 %v1650_v53, %v1650_v53 }
 0x1f5   :  { %1301 = vtanh.f32 %v522_v55  ;;  %v493_v0 = vmul.f32 0.044715, %v477_v59  ;;  %v478_v1 = vmul.f32 %v462_v60, %v1644_v45 }
 0x1f6   :  { %v491_v2 = vmul.f32 0.044715, %v475_v62  ;;  %v476_v3 = vmul.f32 %v460_v63, %v1650_v53  ;;  %v1196_v4 = vpop.f32.mrb[8].mxu1  ;;  %1303 = vtanh.f32 %v520_v61 }
 0x1f7   :  { %v509_v6 = vadd.f32 %v493_v0, %v1634_v31  ;;  %v494_v8 = vmul.f32 0.044715, %v478_v1  ;;  %v1662_v10 = vadd.f32 %v1196_v4, %v1606_v5  ;;  %v424_v11 = vpop.f32.mrb[9].mxu1 }
 0x1f8   :  { %v507_v13 = vadd.f32 %v491_v2, %v1638_v39  ;;  %v492_v14 = vmul.f32 0.044715, %v476_v3  ;;  %v1666_v16 = vadd.f32 %v1606_v5, %v424_v11  ;;  %v1197_v17 = vpop.f32.mrb[10].mxu1 }
 0x1f9   :  { %v525_v18 = vmul.f32 0.7978846, %v509_v6  ;;  %v510_v19 = vadd.f32 %v494_v8, %v1644_v45  ;;  %v465_v20 = vmul.f32 %v1662_v10, %v1662_v10  ;;  %v1672_v21 = vadd.f32 %v1197_v17, %v1606_v5  ;;  %v427_v22 = vpop.f32.mrb[11].mxu1 }
 0x1fa   :  { %v523_v23 = vmul.f32 0.7978846, %v507_v13  ;;  %v508_v25 = vadd.f32 %v492_v14, %v1650_v53  ;;  %v463_v29 = vmul.f32 %v1666_v16, %v1666_v16  ;;  %v1678_v30 = vadd.f32 %v1606_v5, %v427_v22 }
 0x1fb   :  { %1305 = vtanh.f32 %v525_v18  ;;  %v526_v32 = vmul.f32 0.7978846, %v510_v19  ;;  %v481_v33 = vmul.f32 %v465_v20, %v1662_v10  ;;  %v466_v35 = vmul.f32 %v1672_v21, %v1672_v21 }
 0x1fc   :  { %1307 = vtanh.f32 %v523_v23  ;;  %v524_v40 = vmul.f32 0.7978846, %v508_v25  ;;  %v479_v41 = vmul.f32 %v463_v29, %v1666_v16  ;;  %v464_v42 = vmul.f32 %v1678_v30, %v1678_v30 }
 0x1fd   :  { %v1298_v43 = vpop.eup %1297  ;;  %1309 = vtanh.f32 %v526_v32  ;;  %v497_v49 = vmul.f32 0.044715, %v481_v33  ;;  %v482_v50 = vmul.f32 %v466_v35, %v1672_v21 }
 0x1fe   :  { %v1300_v51 = vpop.eup %1299  ;;  %v553_v52 = vadd.f32 1.0, %v1298_v43  ;;  %1311 = vtanh.f32 %v524_v40  ;;  %v495_v55 = vmul.f32 0.044715, %v479_v41  ;;  %v480_v59 = vmul.f32 %v464_v42, %v1678_v30  ;;  %v1200_v60 = vpop.f32.mrb[12].mxu1 }
 0x1ff   :  { %v1302_v61 = vpop.eup %1301  ;;  %v513_v62 = vadd.f32 %v497_v49, %v1662_v10  ;;  %v498_v63 = vmul.f32 0.044715, %v482_v50  ;;  %v1690_v0 = vadd.f32 %v1200_v60, %v1606_v5  ;;  %v440_v1 = vpop.f32.mrb[13].mxu1  ;;  %v551_v2 = vadd.f32 1.0, %v1300_v51 }
 0x200   :  { %v569_v3 = vmul.f32 0.5, %v553_v52  ;;  %v554_v4 = vadd.f32 1.0, %v1302_v61  ;;  %v511_v6 = vadd.f32 %v495_v55, %v1666_v16  ;;  %v496_v8 = vmul.f32 0.044715, %v480_v59  ;;  %v1201_v11 = vpop.f32.mrb[14].mxu1  ;;  %v1304_v20 = vpop.eup %1303 }
 0x201   :  { %v529_v13 = vmul.f32 0.7978846, %v513_v62  ;;  %v514_v14 = vadd.f32 %v498_v63, %v1672_v21  ;;  %v469_v17 = vmul.f32 %v1690_v0, %v1690_v0  ;;  %v1697_v18 = vadd.f32 %v1606_v5, %v440_v1  ;;  %v443_v19 = vpop.f32.mrb[15].mxu1 }
 0x202   :  { %v585_v22 = vmul.f32 %v569_v3, %v1609_v7  ;;  %v570_v23 = vmul.f32 0.5, %v554_v4  ;;  %v527_v25 = vmul.f32 0.7978846, %v511_v6  ;;  %v512_v29 = vadd.f32 %v496_v8, %v1678_v30 }
 0x203   :  { %1313 = vtanh.f32 %v529_v13  ;;  %v530_v32 = vmul.f32 0.7978846, %v514_v14  ;;  %v485_v33 = vmul.f32 %v469_v17, %v1690_v0  ;;  %v467_v35 = vmul.f32 %v1697_v18, %v1697_v18 }
 0x204   :  { %v586_v40 = vmul.f32 %v570_v23, %v1617_v12  ;;  %1315 = vtanh.f32 %v527_v25  ;;  %v528_v41 = vmul.f32 0.7978846, %v512_v29  ;;  %v1706_v42 = vadd.f32 %v1201_v11, %v1606_v5 }
 0x205   :  { %v1306_v43 = vpop.eup %1305  ;;  %1317 = vtanh.f32 %v530_v32  ;;  %v501_v7 = vmul.f32 0.044715, %v485_v33  ;;  %v483_v49 = vmul.f32 %v467_v35, %v1697_v18  ;;  %v1710_v50 = vadd.f32 %v1606_v5, %v443_v19 }
 0x206   :  { %v1308_v51 = vpop.eup %1307  ;;  %v600_v52 = vpack.c.bf16 %v586_v40, %v585_v22  ;;  %1319 = vtanh.f32 %v528_v41  ;;  %v470_v55 = vmul.f32 %v1706_v42, %v1706_v42  ;;  %v552_v12 = vadd.f32 1.0, %v1304_v20 }
 0x207   :  { %v1310_v59 = vpop.eup %1309  ;;  %v517_v60 = vadd.f32 %v501_v7, %v1690_v0  ;;  %v499_v61 = vmul.f32 0.044715, %v483_v49  ;;  %v468_v62 = vmul.f32 %v1710_v50, %v1710_v50  ;;  %v567_v63 = vmul.f32 0.5, %v551_v2 }
 0x208   :  { %v1312_v1 = vpop.eup %1311  ;;  %v486_v3 = vmul.f32 %v470_v55, %v1706_v42  ;;  %v568_v5 = vmul.f32 0.5, %v552_v12  ;;  %v555_v4 = vadd.f32 1.0, %v1308_v51  ;;  %v557_v6 = vadd.f32 1.0, %v1306_v43 }
 0x209   :  { %v533_v8 = vmul.f32 0.7978846, %v517_v60  ;;  %v515_v11 = vadd.f32 %v499_v61, %v1697_v18  ;;  %v484_v13 = vmul.f32 %v468_v62, %v1710_v50  ;;  %v583_v14 = vmul.f32 %v567_v63, %v1612_v9 }
 0x20a   :  { %v502_v17 = vmul.f32 0.044715, %v486_v3  ;;  %v584_v19 = vmul.f32 %v568_v5, %v1622_v15  ;;  %v556_v20 = vadd.f32 1.0, %v1312_v1  ;;  %v571_v22 = vmul.f32 0.5, %v555_v4 }
 0x20b   :  { %1321 = vtanh.f32 %v533_v8  ;;  %v531_v2 = vmul.f32 0.7978846, %v515_v11  ;;  %v500_v23 = vmul.f32 0.044715, %v484_v13  ;;  %v558_v25 = vadd.f32 1.0, %v1310_v59 }
 0x20c   :  { %v518_v29 = vadd.f32 %v502_v17, %v1706_v42  ;;  %v599_v32 = vpack.c.bf16 %v584_v19, %v583_v14  ;;  %v572_v33 = vmul.f32 0.5, %v556_v20  ;;  %v573_v41 = vmul.f32 0.5, %v557_v6 }
 0x20d   :  { %v1314_v35 = vpop.eup %1313  ;;  %1323 = vtanh.f32 %v531_v2  ;;  %v516_v40 = vadd.f32 %v500_v23, %v1710_v50  ;;  %v574_v43 = vmul.f32 0.5, %v558_v25  ;;  %v587_v15 = vmul.f32 %v571_v22, %v1638_v39 }
 0x20e   :  { %v1316_v9 = vpop.eup %1315  ;;  %v534_v7 = vmul.f32 0.7978846, %v518_v29  ;;  %1218 = vmatprep.mubr.bf16.mxu0 %v599_v32  ;;  %v588_v49 = vmul.f32 %v572_v33, %v1650_v53  ;;  %v561_v51 = vadd.f32 1.0, %v1314_v35  ;;  %v589_v59 = vmul.f32 %v573_v41, %v1634_v31 }
 0x20f   :  { %v1318_v55 = vpop.eup %1317  ;;  %v532_v12 = vmul.f32 0.7978846, %v516_v40  ;;  %1219 = vmatmul.mubr.bf16.vlgmr.msra.gmra.mrb[16].mxu0 %v600_v52  ;;  %v590_v60 = vmul.f32 %v574_v43, %v1644_v45  ;;  %v559_v61 = vadd.f32 1.0, %v1316_v9  ;;  %v1289_v43 = vld [vmem:[#allocation5] sm:$0xff]   ;;  %v1407_v9 = vmov 0.0  }
 0x210   :  { %v1320_v62 = vpop.eup %1319  ;;  %1325 = vtanh.f32 %v534_v7  ;;  %v601_v63 = vpack.c.bf16 %v588_v49, %v587_v15  ;;  %v562_v1 = vadd.f32 1.0, %v1318_v55  ;;  %v577_v3 = vmul.f32 0.5, %v561_v51  ;;  %1234 = vmatprep.subr.bf16.mxu1 %v1407_v9  ;;  %v1290_v7 = vld [vmem:[#allocation5 + $0x8] sm:$0xff]   ;;  %v1291_v15 = vld [vmem:[#allocation5 + $0x10] sm:$0xff]   ;;  %v1296_v49 = vld [vmem:[#allocation5 + $0x38] sm:$0xff]   ;;  %1250 = vmatprep.mubr.msk.bf16.mxu1 %vm1408_vm1, %v1407_v9 }
 0x211   :  { %1327 = vtanh.f32 %v532_v12  ;;  %v602_v5 = vpack.c.bf16 %v590_v60, %v589_v59  ;;  %v560_v4 = vadd.f32 1.0, %v1320_v62  ;;  %v575_v39 = vmul.f32 0.5, %v559_v61  ;;  %1235 = vmatpush3.bf16.msra.mxu1 %v1289_v43  ;;  %v1740_v59 = vld [vmem:[%s1795_s6] ss:$0 sm:$0xff] }
 0x212   :  { %1222 = vmatprep.mubr.bf16.mxu0 %v601_v63  ;;  %v578_v53 = vmul.f32 0.5, %v562_v1  ;;  %v593_v8 = vmul.f32 %v577_v3, %v1662_v10  ;;  %1236 = vmatprep.subr.bf16.mxu1 %v1407_v9 }
 0x213   :  { %v576_v6 = vmul.f32 0.5, %v560_v4  ;;  %v591_v45 = vmul.f32 %v575_v39, %v1666_v16 }
 0x214   :  { %v594_v52 = vmul.f32 %v578_v53, %v1672_v21 }
 0x215   :  { %v1322_v31 = vpop.eup %1321  ;;  %v592_v11 = vmul.f32 %v576_v6, %v1678_v30  ;;  %1237 = vmatpush3.bf16.msra.mxu1 %v1290_v7 }
 0x216   :  { %v604_v13 = vpack.c.bf16 %v594_v52, %v593_v8  ;;  %v565_v19 = vadd.f32 1.0, %v1322_v31  ;;  %1238 = vmatprep.subr.bf16.mxu1 %v1407_v9 }
 0x217   :  { %v1324_v14 = vpop.eup %1323  ;;  %1223 = vmatmul.mubr.bf16.gmra.mrb[20].mxu0 %v602_v5  ;;  %v603_v17 = vpack.c.bf16 %v592_v11, %v591_v45 }
 0x218   :  { %v563_v20 = vadd.f32 1.0, %v1324_v14  ;;  %v581_v25 = vmul.f32 0.5, %v565_v19 }
 0x219   :  { %1226 = vmatprep.mubr.bf16.mxu0 %v603_v17  ;;  %1239 = vmatpush3.bf16.msra.mxu1 %v1291_v15 }
 0x21a   :  { %v1326_v22 = vpop.eup %1325  ;;  %v579_v10 = vmul.f32 0.5, %v563_v20  ;;  %v597_v16 = vmul.f32 %v581_v25, %v1690_v0  ;;  %1240 = vmatprep.subr.bf16.mxu1 %v1407_v9  ;;  %v1292_v0 = vld [vmem:[#allocation5 + $0x18] sm:$0xff]  }
 0x21b   :  { %v1328_v2 = vpop.eup %1327  ;;  %v566_v23 = vadd.f32 1.0, %v1326_v22 }
 0x21c   :  { %v564_v29 = vadd.f32 1.0, %v1328_v2  ;;  %v595_v33 = vmul.f32 %v579_v10, %v1697_v18  ;;  %v1293_v18 = vld [vmem:[#allocation5 + $0x20] sm:$0xff]  }
 0x21d   :  { %v582_v32 = vmul.f32 0.5, %v566_v23  ;;  %1241 = vmatpush3.bf16.msra.mxu1 %v1292_v0 }
 0x21e   :  { %v580_v21 = vmul.f32 0.5, %v564_v29  ;;  %1242 = vmatprep.subr.bf16.mxu1 %v1407_v9 }
 0x21f   :  { %1227 = vmatmul.mubr.bf16.gmra.mrb[24].mxu0 %v604_v13  ;;  %v598_v30 = vmul.f32 %v582_v32, %v1706_v42  ;;  %v1294_v42 = vld [vmem:[#allocation5 + $0x28] sm:$0xff]  }
 0x220   :  { %v596_v35 = vmul.f32 %v580_v21, %v1710_v50  ;;  %v1295_v50 = vld [vmem:[#allocation5 + $0x30] sm:$0xff]  }
 0x221   :  { %v606_v40 = vpack.c.bf16 %v598_v30, %v597_v16  ;;  %1243 = vmatpush3.bf16.msra.mxu1 %v1293_v18 }
 0x222   :  { %v605_v41 = vpack.c.bf16 %v596_v35, %v595_v33  ;;  %1244 = vmatprep.subr.bf16.mxu1 %v1407_v9 }
 0x224   :  { %1230 = vmatprep.mubr.bf16.mxu0 %v605_v41 }
 0x225   :  { %1245 = vmatpush3.bf16.msra.mxu1 %v1294_v42 }
 0x226   :  { %1246 = vmatprep.subr.bf16.mxu1 %v1407_v9 }
 0x227   :  { %1231 = vmatmul.mubr.bf16.gmra.mrb[28].mxu0 %v606_v40 }
 0x229   :  { %1247 = vmatpush3.bf16.msra.mxu1 %v1295_v50 }
 0x22a   :  { %1248 = vmatprep.subr.bf16.mxu1 %v1407_v9 }
 0x22d   :  { %1249 = vmatpush3.bf16.msra.mxu1 %v1296_v49 }
 0x2e2   :  { %v1220_v51 = vpop.f32.mrb[16].mxu0 }
 0x2e3   :  { %v770_v55 = vadd.f32 %v1220_v51, %v1561_v28  ;;  %v705_v12 = vpop.f32.mrb[17].mxu0 }
 0x2e4   :  { %v768_v60 = vadd.f32 %v705_v12, %v1557_v26  ;;  %v1221_v61 = vpop.f32.mrb[18].mxu0 }
 0x2e5   :  { %v771_v62 = vadd.f32 %v1221_v61, %v1555_v24  ;;  %v708_v63 = vpop.f32.mrb[19].mxu0  ;;  %v793_v3 = vadd.f32 %v1740_v59, %v770_v55 }
 0x2e6   :  { %v769_v1 = vadd.f32 %v708_v63, %v1559_v27  ;;  %v791_v28 = vadd.f32 %v1740_v59, %v768_v60 }
 0x2e7   :  { %v794_v5 = vadd.f32 %v1740_v59, %v771_v62 }
 0x2e8   :  { %v792_v4 = vadd.f32 %v1740_v59, %v769_v1 }
 0x2e9   :  { %v814_v39 = vadd.f32 %v794_v5, %v793_v3 }
 0x2ea   :  { %v807_v53 = vadd.f32 %v792_v4, %v791_v28  ;;  %v1224_v6 = vpop.f32.mrb[20].mxu0 }
 0x2eb   :  { %v815_v8 = vrot.slane %v814_v39, 4  ;;  %v774_v26 = vadd.f32 %v1224_v6, %v1573_v38  ;;  %v721_v52 = vpop.f32.mrb[21].mxu0 }
 0x2ec   :  { %v808_v31 = vrot.slane %v807_v53, 4  ;;  %v772_v24 = vadd.f32 %v721_v52, %v1569_v36  ;;  %v1225_v45 = vpop.f32.mrb[22].mxu0 }
 0x2ed   :  { %v816_v27 = vadd.f32 %v815_v8, %v814_v39  ;;  %v775_v11 = vadd.f32 %v1225_v45, %v1567_v34  ;;  %v724_v13 = vpop.f32.mrb[23].mxu0  ;;  %v797_v20 = vadd.f32 %v1740_v59, %v774_v26 }
 0x2ee   :  { %v809_v14 = vadd.f32 %v808_v31, %v807_v53  ;;  %v773_v17 = vadd.f32 %v724_v13, %v1571_v37  ;;  %v795_v38 = vadd.f32 %v1740_v59, %v772_v24 }
 0x2ef   :  { %v817_v19 = vrot.slane %v816_v27, 2  ;;  %v798_v22 = vadd.f32 %v1740_v59, %v775_v11 }
 0x2f0   :  { %v810_v2 = vrot.slane %v809_v14, 2  ;;  %v796_v23 = vadd.f32 %v1740_v59, %v773_v17 }
 0x2f1   :  { %v818_v25 = vadd.f32 %v817_v19, %v816_v27  ;;  %v828_v36 = vadd.f32 %v798_v22, %v797_v20 }
 0x2f2   :  { %v811_v29 = vadd.f32 %v810_v2, %v809_v14  ;;  %v821_v10 = vadd.f32 %v796_v23, %v795_v38  ;;  %v1228_v32 = vpop.f32.mrb[24].mxu0 }
 0x2f3   :  { %v819_v34 = vrot.slane %v818_v25, 1  ;;  %v829_v21 = vrot.slane %v828_v36, 4  ;;  %v778_v16 = vadd.f32 %v1228_v32, %v1585_v48  ;;  %v737_v37 = vpop.f32.mrb[25].mxu0 }
 0x2f4   :  { %v812_v30 = vrot.slane %v811_v29, 1  ;;  %v822_v33 = vrot.slane %v821_v10, 4  ;;  %v776_v35 = vadd.f32 %v737_v37, %v1581_v46  ;;  %v1229_v40 = vpop.f32.mrb[26].mxu0 }
 0x2f5   :  { %v820_v41 = vadd.f32 %v819_v34, %v818_v25  ;;  %v830_v43 = vadd.f32 %v829_v21, %v828_v36  ;;  %v779_v9 = vadd.f32 %v1229_v40, %v1579_v44  ;;  %v740_v7 = vpop.f32.mrb[27].mxu0  ;;  %v801_v49 = vadd.f32 %v1740_v59, %v778_v16 }
 0x2f6   :  { %v813_v15 = vadd.f32 %v812_v30, %v811_v29  ;;  %v823_v0 = vadd.f32 %v822_v33, %v821_v10  ;;  %v777_v18 = vadd.f32 %v740_v7, %v1583_v47  ;;  %v799_v46 = vadd.f32 %v1740_v59, %v776_v35 }
 0x2f7   :  { %v865_v42 = vmul.f32 0.0625, %v820_v41  ;;  %v831_v50 = vrot.slane %v830_v43, 2  ;;  %v802_v48 = vadd.f32 %v1740_v59, %v779_v9 }
 0x2f8   :  { %v864_v51 = vmul.f32 0.0625, %v813_v15  ;;  %v824_v55 = vrot.slane %v823_v0, 2  ;;  %v800_v12 = vadd.f32 %v1740_v59, %v777_v18 }
 0x2f9   :  { %v873_v60 = vpack.c.bf16 %v865_v42, %v865_v42  ;;  %v832_v61 = vadd.f32 %v831_v50, %v830_v43  ;;  %v842_v44 = vadd.f32 %v802_v48, %v801_v49 }
 0x2fa   :  { %v872_v62 = vpack.c.bf16 %v864_v51, %v864_v51  ;;  %v825_v63 = vadd.f32 %v824_v55, %v823_v0  ;;  %v835_v1 = vadd.f32 %v800_v12, %v799_v46  ;;  %v1232_v47 = vpop.f32.mrb[28].mxu0 }
 0x2fb   :  { %v912_v3 = vunpack.c.l.b16 %v873_v60  ;;  %v833_v5 = vrot.slane %v832_v61, 1  ;;  %v843_v28 = vrot.slane %v842_v44, 4  ;;  %v782_v4 = vadd.f32 %v1232_v47, %v1597_v58  ;;  %v753_v39 = vpop.f32.mrb[29].mxu0 }
 0x2fc   :  { %v911_v53 = vunpack.c.l.b16 %v872_v62  ;;  %v826_v6 = vrot.slane %v825_v63, 1  ;;  %v836_v8 = vrot.slane %v835_v1, 4  ;;  %v780_v26 = vadd.f32 %v753_v39, %v1593_v56  ;;  %v1233_v52 = vpop.f32.mrb[30].mxu0 }
 0x2fd   :  { %v834_v31 = vadd.f32 %v833_v5, %v832_v61  ;;  %v844_v24 = vadd.f32 %v843_v28, %v842_v44  ;;  %v783_v45 = vadd.f32 %v1233_v52, %v1591_v54  ;;  %v756_v27 = vpop.f32.mrb[31].mxu0  ;;  %v805_v17 = vadd.f32 %v1740_v59, %v782_v4 }
 0x2fe   :  { %v920_v11 = vsel %vm919_vm2, %v912_v3, %v911_v53  ;;  %v827_v13 = vadd.f32 %v826_v6, %v825_v63  ;;  %v837_v14 = vadd.f32 %v836_v8, %v835_v1  ;;  %v781_v22 = vadd.f32 %v756_v27, %v1595_v57  ;;  %v1084_v53 = vld [vmem:[%s1797_s8] ss:$0 sm:$0xff] }
 0x2ff   :  { %v867_v19 = vmul.f32 0.0625, %v834_v31  ;;  %v845_v58 = vrot.slane %v844_v24, 2  ;;  %v806_v20 = vadd.f32 %v1740_v59, %v783_v45  ;;  %v803_v38 = vadd.f32 %v1740_v59, %v780_v26 }
 0x300   :  { %v866_v2 = vmul.f32 0.0625, %v827_v13  ;;  %v838_v56 = vrot.slane %v837_v14, 2  ;;  %v804_v36 = vadd.f32 %v1740_v59, %v781_v22 }
 0x301   :  { %v875_v23 = vpack.c.bf16 %v867_v19, %v867_v19  ;;  %v846_v25 = vadd.f32 %v845_v58, %v844_v24  ;;  %v856_v54 = vadd.f32 %v806_v20, %v805_v17 }
 0x302   :  { %v874_v29 = vpack.c.bf16 %v866_v2, %v866_v2  ;;  %v839_v10 = vadd.f32 %v838_v56, %v837_v14  ;;  %v849_v21 = vadd.f32 %v804_v36, %v803_v38 }
 0x303   :  { %v847_v32 = vrot.slane %v846_v25, 1  ;;  %v857_v34 = vrot.slane %v856_v54, 4  ;;  %v914_v30 = vunpack.c.l.b16 %v875_v23 }
 0x304   :  { %v913_v16 = vunpack.c.l.b16 %v874_v29  ;;  %v840_v37 = vrot.slane %v839_v10, 1  ;;  %v850_v35 = vrot.slane %v849_v21, 4 }
 0x305   :  { %v848_v57 = vadd.f32 %v847_v32, %v846_v25  ;;  %v858_v33 = vadd.f32 %v857_v34, %v856_v54 }
 0x306   :  { %v922_v40 = vsel %vm921_vm3, %v913_v16, %v920_v11  ;;  %v841_v41 = vadd.f32 %v840_v37, %v839_v10  ;;  %v851_v15 = vadd.f32 %v850_v35, %v849_v21 }
 0x307   :  { %v869_v43 = vmul.f32 0.0625, %v848_v57  ;;  %v924_v9 = vsel %vm923_vm4, %v914_v30, %v922_v40  ;;  %v859_v7 = vrot.slane %v858_v33, 2 }
 0x308   :  { %v868_v59 = vmul.f32 0.0625, %v841_v41  ;;  %v852_v42 = vrot.slane %v851_v15, 2 }
 0x309   :  { %v877_v0 = vpack.c.bf16 %v869_v43, %v869_v43  ;;  %v860_v18 = vadd.f32 %v859_v7, %v858_v33 }
 0x30a   :  { %v876_v50 = vpack.c.bf16 %v868_v59, %v868_v59  ;;  %v853_v48 = vadd.f32 %v852_v42, %v851_v15 }
 0x30b   :  { %v861_v49 = vrot.slane %v860_v18, 1  ;;  %v916_v55 = vunpack.c.l.b16 %v877_v0 }
 0x30c   :  { %v915_v51 = vunpack.c.l.b16 %v876_v50  ;;  %v854_v12 = vrot.slane %v853_v48, 1 }
 0x30d   :  { %v862_v46 = vadd.f32 %v861_v49, %v860_v18 }
 0x30e   :  { %v926_v60 = vsel %vm925_vm5, %v915_v51, %v924_v9  ;;  %v855_v44 = vadd.f32 %v854_v12, %v853_v48 }
 0x30f   :  { %v871_v61 = vmul.f32 0.0625, %v862_v46  ;;  %v928_v62 = vsel %vm927_vm6, %v916_v55, %v926_v60 }
 0x310   :  { %v870_v63 = vmul.f32 0.0625, %v855_v44 }
 0x311   :  { %v879_v1 = vpack.c.bf16 %v871_v61, %v871_v61 }
 0x312   :  { %v878_v47 = vpack.c.bf16 %v870_v63, %v870_v63 }
 0x313   :  { %v918_v5 = vunpack.c.l.b16 %v879_v1 }
 0x314   :  { %v917_v3 = vunpack.c.l.b16 %v878_v47 }
 0x316   :  { %v930_v28 = vsel %vm929_vm7, %v917_v3, %v928_v62 }
 0x317   :  { %v932_v4 = vsel %vm931_vm8, %v918_v5, %v930_v28 }
 0x318   :  { %v933_v39 = vpack.c.b16 %v932_v4, %v932_v4 }
 0x31a   :  { %1251 = vmatmul.mubr.bf16.vlgmr.msra.gmra.mrb[16].mxu1 %v933_v39 }
 0x3ed   :  { %v1017_v6 = vpop.f32.mrb[16].mxu1 }
 0x3ee   :  { %v1018_v8 = vadd.f32 %v1084_v53, %v1017_v6  ;;  %v1252_v26 = vpop.f32.mrb[17].mxu1 }
 0x3ef   :  { %v1020_v52 = vpop.f32.mrb[18].mxu1 }
 0x3f0   :  { %v1253_v31 = vpop.f32.mrb[19].mxu1  ;;  %v1023_v24 = vmul.f32 %v1018_v8, %v1018_v8 }
 0x3f2   :  { %1024 = vadd.xlane.f32.xlu0 %v1023_v24 }
 0x47f   :  { %v1025_v45 = vpop.xlane.xlu0 %1024 }
 0x480   :  { %1329 = vrsqrt.f32 %v1025_v45 }
 0x48a   :  { %v1330_v27 = vpop.eup %1329 }
 0x48b   :  { %v1027_v11 = vmul.f32 %v1330_v27, %v1018_v8 }
 0x48d   :  { %1028 = vst [vmem:[#allocation7] sm:$0xff] %v1027_v11 }
 0x48e   :  { %1386 = shalt.err (!%p1383_p6)
}
 0x48f   :  { %s1387_s10 = scalar_lea.hbm %s1798_s9, 128 }
 0x490   :  { %p1388_p7 = scmp.ne.s32.totalorder %s1798_s9, %s1387_s10  ;;  %p1391_p8 = scmp.lt.u32.totalorder %s1387_s10, %s1798_s9 }
 0x492   :  { %p1393_p9 = pnand %p1391_p8, %p1388_p7 }
 0x494   :  { %1396 = shalt.err (!%p1393_p9)
}
 0x495   :  { %1038 = dma.vmem_to_hbm [thread:$0]  %s1036_s11, 128, %s1798_s9, [#allocation4]  }
 0x496   :  { %1401 = dma.done.wait [#allocation4], 128  }
 0x497   :  { %1402 = vsyncadd [#allocation4], 4294967168 }
 0x498   :  { %1042 = vsyncpa [#allocation3], 1 }
 0x499   :  { %1043 = vsyncpa [#allocation6], 1 }
 0x49a   :  { %1044 = vsyncpa [#allocation4], 1 }

</bundles_post_ra>
